<compile_context>
chip_gen: v6e
topology: v6e:2x2x1
jax: 0.10.0
libtpu: 0.0.40
codegen_flags: <defaults>
</compile_context>

<pallas_src>
import functools

import numpy as np
import jax
import jax.numpy as jnp
from jax import lax
from jax.experimental import pallas as pl
from jax.experimental.pallas import tpu as pltpu


def _nms_kernel(x_ref, out_ref, d_ref, *, conf_thres, iou_thres, max_wh,
                n_iter, max_out):
    f32 = jnp.float32
    p = x_ref[0]                                   # (5+nc, N), anchors on lanes
    c5, n = p.shape
    nc = c5 - 5

    cx = p[0:1, :]
    cy = p[1:2, :]
    w = p[2:3, :]
    h = p[3:4, :]
    obj = p[4:5, :]

    # conf = obj_conf * cls_conf, best class (first index on ties, like torch)
    cls_scores = p[5:, :] * obj                                    # (nc, N)
    conf = jnp.max(cls_scores, axis=0, keepdims=True)              # (1, N)
    cls_iota = lax.broadcasted_iota(jnp.int32, (nc, n), 0).astype(f32)
    cls_idx = jnp.min(jnp.where(cls_scores >= conf, cls_iota, float(nc)),
                      axis=0, keepdims=True)                       # (1, N)

    # xywh -> xyxy
    x1 = cx - w * 0.5
    y1 = cy - h * 0.5
    x2 = cx + w * 0.5
    y2 = cy + h * 0.5

    cand = (obj > conf_thres) & (conf > conf_thres)

    # class-aware NMS: offset boxes by class * max_wh (outputs keep raw boxes)
    off = cls_idx * max_wh
    bx1 = x1 + off
    by1 = y1 + off
    bx2 = x2 + off
    by2 = y2 + off
    area = (bx2 - bx1) * (by2 - by1)

    lane = lax.broadcasted_iota(jnp.int32, (1, n), 1).astype(f32)
    scores0 = jnp.where(cand, conf, -1.0)                          # (1, N)
    rank0 = jnp.full((1, n), max_out, jnp.int32)                   # "unselected"
    count0 = jnp.zeros((1, 1), jnp.int32)

    def body(_, carry):
        scores, rank, count = carry
        m = jnp.max(scores, axis=-1, keepdims=True)                # (1, 1)
        valid = m > 0.0                                            # (1, 1) bool
        is_max = scores >= m
        sel_idx = jnp.min(jnp.where(is_max, lane, float(n)),
                          axis=-1, keepdims=True)                  # first argmax
        onehot = lane == sel_idx                                   # (1, N) bool
        oh = onehot.astype(f32)
        sx1 = jnp.sum(oh * bx1, axis=-1, keepdims=True)
        sy1 = jnp.sum(oh * by1, axis=-1, keepdims=True)
        sx2 = jnp.sum(oh * bx2, axis=-1, keepdims=True)
        sy2 = jnp.sum(oh * by2, axis=-1, keepdims=True)
        sa = jnp.sum(oh * area, axis=-1, keepdims=True)
        iw = jnp.maximum(jnp.minimum(sx2, bx2) - jnp.maximum(sx1, bx1), 0.0)
        ih = jnp.maximum(jnp.minimum(sy2, by2) - jnp.maximum(sy1, by1), 0.0)
        inter = iw * ih
        iou = inter / (sa + area - inter)
        suppress = onehot | (iou > iou_thres)
        scores = jnp.where(valid & suppress, -1.0, scores)
        rank = jnp.where(valid & onehot, count, rank)
        count = count + valid.astype(jnp.int32)
        return scores, rank, count

    _, rank, _ = lax.fori_loop(0, n_iter, body, (scores0, rank0, count0))

    # Detection matrix: one component per sublane row, lane-dense along anchors.
    d_ref[0:1, :] = x1
    d_ref[1:2, :] = y1
    d_ref[2:3, :] = x2
    d_ref[3:4, :] = y2
    d_ref[4:5, :] = conf
    d_ref[5:6, :] = cls_idx
    d_ref[6:7, :] = jnp.ones_like(conf)     # validity flag column
    d_ref[7:8, :] = jnp.zeros_like(conf)    # pad row (keeps 8 sublanes)

    # Gather selections in score order with a single one-hot MXU matmul:
    # out[:, r] = detection of the box selected at rank r (zeros if unused).
    rows = lax.broadcasted_iota(jnp.int32, (max_out, n), 0)
    sel = (rows == rank).astype(f32)                                # (max_out, N)
    out_t = lax.dot_general(d_ref[...], sel,
                            dimension_numbers=(((1,), (1,)), ((), ())),
                            preferred_element_type=f32)             # (8, max_out)
    out_ref[0] = out_t


def yolo_nms(pred, conf_thres=0.25, iou_thres=0.45, max_det=1000, max_wh=4096.0):
    """pred: (B, N, 5+nc) raw predictions [cx, cy, w, h, obj, cls...].

    Returns (detections, counts):
      detections: (B, max_out, 6) float32 rows [x1, y1, x2, y2, conf, cls],
                  sorted by descending confidence, zero-padded past counts[b].
      counts:     (B,) int32 number of valid detections per image.
    """
    pred = jnp.asarray(pred, jnp.float32)
    b, n, c5 = pred.shape
    assert c5 >= 6, "predictions need [x, y, w, h, obj, >=1 class]"
    assert n % 128 == 0, "pad the anchor dimension to a multiple of 128"
    n_iter = min(int(max_det), n)
    max_out = ((n_iter + 127) // 128) * 128

    pred_t = jnp.transpose(pred, (0, 2, 1))            # (B, 5+nc, N) lane-dense

    kernel = functools.partial(
        _nms_kernel, conf_thres=float(conf_thres), iou_thres=float(iou_thres),
        max_wh=float(max_wh), n_iter=n_iter, max_out=max_out)

    out_t = pl.pallas_call(
        kernel,
        out_shape=jax.ShapeDtypeStruct((b, 8, max_out), jnp.float32),
        grid=(b,),
        in_specs=[pl.BlockSpec((1, c5, n), lambda i: (i, 0, 0))],
        out_specs=pl.BlockSpec((1, 8, max_out), lambda i: (i, 0, 0)),
        scratch_shapes=[pltpu.VMEM((8, n), jnp.float32)],
        compiler_params=pltpu.CompilerParams(
            dimension_semantics=("parallel",)),
    )(pred_t)

    det = jnp.transpose(out_t[:, :6, :], (0, 2, 1))     # (B, max_out, 6)
    counts = jnp.sum((out_t[:, 6, :] > 0.5).astype(jnp.int32), axis=-1)
    return det, counts


def _nms_reference(pred, conf_thres, iou_thres, max_det, max_wh=4096.0):
    """Pure-numpy reference matching YOLOv5 non_max_suppression (best-class)."""
    pred = np.asarray(pred, np.float32)
    outs = []
    for x in pred:
        x = x[x[:, 4] > conf_thres]
        if x.shape[0] == 0:
            outs.append(np.zeros((0, 6), np.float32))
            continue
        cls = x[:, 5:] * x[:, 4:5]
        conf = cls.max(1)
        j = cls.argmax(1).astype(np.float32)
        box = np.stack([x[:, 0] - x[:, 2] * 0.5, x[:, 1] - x[:, 3] * 0.5,
                        x[:, 0] + x[:, 2] * 0.5, x[:, 1] + x[:, 3] * 0.5], 1)
        keep = conf > conf_thres
        box, conf, j = box[keep], conf[keep], j[keep]
        if box.shape[0] == 0:
            outs.append(np.zeros((0, 6), np.float32))
            continue
        bb = box + j[:, None] * max_wh
        areas = (bb[:, 2] - bb[:, 0]) * (bb[:, 3] - bb[:, 1])
        order = np.argsort(-conf)
        suppressed = np.zeros(bb.shape[0], bool)
        picked = []
        for idx in order:
            if suppressed[idx]:
                continue
            picked.append(idx)
            if len(picked) >= max_det:
                break
            ix1 = np.maximum(bb[idx, 0], bb[:, 0])
            iy1 = np.maximum(bb[idx, 1], bb[:, 1])
            ix2 = np.minimum(bb[idx, 2], bb[:, 2])
            iy2 = np.minimum(bb[idx, 3], bb[:, 3])
            inter = np.maximum(ix2 - ix1, 0.0) * np.maximum(iy2 - iy1, 0.0)
            iou = inter / (areas[idx] + areas - inter)
            suppressed |= iou > iou_thres
        picked = np.asarray(picked, np.int64)
        outs.append(np.concatenate(
            [box[picked], conf[picked, None], j[picked, None]], 1).astype(np.float32))
    return outs


if __name__ == "__main__":
    B, N, NC = 2, 256, 3                       # batch=2, anchors=256, classes=3
    CONF, IOU, MAX_DET = 0.25, 0.45, 1000      # NMS module defaults

    key = jax.random.PRNGKey(0)
    k1, k2, k3, k4 = jax.random.split(key, 4)
    cxy = jax.random.uniform(k1, (B, N, 2), jnp.float32, 0.0, 320.0)
    wh = jax.random.uniform(k2, (B, N, 2), jnp.float32, 20.0, 160.0)
    obj = jax.nn.sigmoid(2.0 * jax.random.normal(k3, (B, N, 1), jnp.float32))
    cls = jax.nn.sigmoid(2.0 * jax.random.normal(k4, (B, N, NC), jnp.float32))
    pred = jnp.concatenate([cxy, wh, obj, cls], axis=-1)   # (B, N, 5+NC)

    det, counts = yolo_nms(pred, conf_thres=CONF, iou_thres=IOU, max_det=MAX_DET)
    det = jax.block_until_ready(det)
    counts = np.asarray(counts)
    det_np = np.asarray(det)

    ref = _nms_reference(np.asarray(pred), CONF, IOU, MAX_DET)
    assert int(counts.sum()) > 0, "test data produced no detections"
    for bi in range(B):
        rb = ref[bi]
        assert int(counts[bi]) == rb.shape[0], (int(counts[bi]), rb.shape[0])
        got = det_np[bi, : counts[bi], :]
        np.testing.assert_allclose(got, rb, rtol=1e-4, atol=1e-3)
        assert np.all(det_np[bi, counts[bi]:, :] == 0.0)   # padding is exact zero

    print("KERNEL_OK")
</pallas_src>

<mosaic_0001>
module attributes {stable_mosaic.version = 11 : i64} {
  func.func @_nms_kernel(%arg0: i32, %arg1: memref<1x8x256xf32, #tpu.memory_space<vmem>>, %arg2: memref<1x8x256xf32, #tpu.memory_space<vmem>>, %arg3: memref<8x256xf32, #tpu.memory_space<vmem>>) attributes {dimension_semantics = [#tpu.dimension_semantics<parallel>], iteration_bounds = array<i64: 2>, scalar_prefetch = 0 : i64, scratch_operands = 1 : i64, tpu.core_type = #tpu.core_type<tc>, window_params = [{transform_indices = @transform_0, window_bounds = array<i64: 1, 8, 256>}, {transform_indices = @transform_1, window_bounds = array<i64: 1, 8, 256>}]} {
    %c0 = arith.constant 0 : index
    %c0_0 = arith.constant 0 : index
    %c0_1 = arith.constant 0 : index
    %0 = vector.load %arg1[%c0, %c0_0, %c0_1] : memref<1x8x256xf32, #tpu.memory_space<vmem>>, vector<1x8x256xf32>
    %1 = vector.shape_cast %0 : vector<1x8x256xf32> to vector<8x256xf32>
    %2 = vector.extract_strided_slice %1 {offsets = [0, 0], sizes = [1, 256], strides = [1, 1]} : vector<8x256xf32> to vector<1x256xf32>
    %3 = vector.extract_strided_slice %1 {offsets = [1, 0], sizes = [1, 256], strides = [1, 1]} : vector<8x256xf32> to vector<1x256xf32>
    %4 = vector.extract_strided_slice %1 {offsets = [2, 0], sizes = [1, 256], strides = [1, 1]} : vector<8x256xf32> to vector<1x256xf32>
    %5 = vector.extract_strided_slice %1 {offsets = [3, 0], sizes = [1, 256], strides = [1, 1]} : vector<8x256xf32> to vector<1x256xf32>
    %6 = vector.extract_strided_slice %1 {offsets = [4, 0], sizes = [1, 256], strides = [1, 1]} : vector<8x256xf32> to vector<1x256xf32>
    %7 = vector.extract_strided_slice %1 {offsets = [5, 0], sizes = [3, 256], strides = [1, 1]} : vector<8x256xf32> to vector<3x256xf32>
    %8 = vector.broadcast %6 : vector<1x256xf32> to vector<3x256xf32>
    %9 = arith.mulf %7, %8 : vector<3x256xf32>
    %cst = arith.constant dense<0xFF800000> : vector<256xf32>
    %10 = vector.multi_reduction <maximumf>, %9, %cst [0] : vector<3x256xf32> to vector<256xf32>
    %11 = vector.shape_cast %10 : vector<256xf32> to vector<1x256xf32>
    %12 = tpu.iota {dimensions = array<i32: 0>} : vector<3x256xi32>
    %13 = arith.sitofp %12 : vector<3x256xi32> to vector<3x256xf32>
    %14 = vector.broadcast %11 : vector<1x256xf32> to vector<3x256xf32>
    %15 = arith.cmpf oge, %9, %14 : vector<3x256xf32>
    %cst_2 = arith.constant 3.000000e+00 : f32
    %16 = vector.broadcast %cst_2 : f32 to vector<3x256xf32>
    %17 = arith.select %15, %13, %16 : vector<3x256xi1>, vector<3x256xf32>
    %cst_3 = arith.constant dense<0x7F800000> : vector<256xf32>
    %18 = vector.multi_reduction <minimumf>, %17, %cst_3 [0] : vector<3x256xf32> to vector<256xf32>
    %19 = vector.shape_cast %18 : vector<256xf32> to vector<1x256xf32>
    %cst_4 = arith.constant 5.000000e-01 : f32
    %20 = vector.broadcast %cst_4 : f32 to vector<1x256xf32>
    %21 = arith.mulf %4, %20 : vector<1x256xf32>
    %22 = arith.subf %2, %21 : vector<1x256xf32>
    %cst_5 = arith.constant 5.000000e-01 : f32
    %23 = vector.broadcast %cst_5 : f32 to vector<1x256xf32>
    %24 = arith.mulf %5, %23 : vector<1x256xf32>
    %25 = arith.subf %3, %24 : vector<1x256xf32>
    %cst_6 = arith.constant 5.000000e-01 : f32
    %26 = vector.broadcast %cst_6 : f32 to vector<1x256xf32>
    %27 = arith.mulf %4, %26 : vector<1x256xf32>
    %28 = arith.addf %2, %27 : vector<1x256xf32>
    %cst_7 = arith.constant 5.000000e-01 : f32
    %29 = vector.broadcast %cst_7 : f32 to vector<1x256xf32>
    %30 = arith.mulf %5, %29 : vector<1x256xf32>
    %31 = arith.addf %3, %30 : vector<1x256xf32>
    %cst_8 = arith.constant 2.500000e-01 : f32
    %32 = vector.broadcast %cst_8 : f32 to vector<1x256xf32>
    %33 = arith.cmpf ogt, %6, %32 : vector<1x256xf32>
    %cst_9 = arith.constant 2.500000e-01 : f32
    %34 = vector.broadcast %cst_9 : f32 to vector<1x256xf32>
    %35 = arith.cmpf ogt, %11, %34 : vector<1x256xf32>
    %36 = arith.andi %33, %35 : vector<1x256xi1>
    %cst_10 = arith.constant 4.096000e+03 : f32
    %37 = vector.broadcast %cst_10 : f32 to vector<1x256xf32>
    %38 = arith.mulf %19, %37 : vector<1x256xf32>
    %39 = arith.addf %22, %38 : vector<1x256xf32>
    %40 = arith.addf %25, %38 : vector<1x256xf32>
    %41 = arith.addf %28, %38 : vector<1x256xf32>
    %42 = arith.addf %31, %38 : vector<1x256xf32>
    %43 = arith.subf %41, %39 : vector<1x256xf32>
    %44 = arith.subf %42, %40 : vector<1x256xf32>
    %45 = arith.mulf %43, %44 : vector<1x256xf32>
    %46 = tpu.iota {dimensions = array<i32: 1>} : vector<1x256xi32>
    %47 = arith.sitofp %46 : vector<1x256xi32> to vector<1x256xf32>
    %cst_11 = arith.constant -1.000000e+00 : f32
    %48 = vector.broadcast %cst_11 : f32 to vector<1x256xf32>
    %49 = arith.select %36, %11, %48 : vector<1x256xi1>, vector<1x256xf32>
    %c256_i32 = arith.constant 256 : i32
    %50 = vector.broadcast %c256_i32 : i32 to vector<1x256xi32>
    %c0_i32 = arith.constant 0 : i32
    %51 = vector.broadcast %c0_i32 : i32 to vector<1x1xi32>
    %c0_i32_12 = arith.constant 0 : i32
    %c256_i32_13 = arith.constant 256 : i32
    %52 = arith.addi %c0_i32_12, %c256_i32_13 : i32
    %c1_i32 = arith.constant 1 : i32
    %53:3 = scf.for %arg4 = %c0_i32_12 to %52 step %c1_i32 iter_args(%arg5 = %49, %arg6 = %50, %arg7 = %51) -> (vector<1x256xf32>, vector<1x256xi32>, vector<1x1xi32>)  : i32 {
      %cst_31 = arith.constant dense<0xFF800000> : vector<1xf32>
      %74 = vector.multi_reduction <maximumf>, %arg5, %cst_31 [1] : vector<1x256xf32> to vector<1xf32>
      %75 = vector.shape_cast %74 : vector<1xf32> to vector<1x1xf32>
      %cst_32 = arith.constant 0.000000e+00 : f32
      %76 = vector.broadcast %cst_32 : f32 to vector<1x1xf32>
      %77 = arith.cmpf ogt, %75, %76 : vector<1x1xf32>
      %78 = vector.broadcast %75 : vector<1x1xf32> to vector<1x256xf32>
      %79 = arith.cmpf oge, %arg5, %78 : vector<1x256xf32>
      %cst_33 = arith.constant 2.560000e+02 : f32
      %80 = vector.broadcast %cst_33 : f32 to vector<1x256xf32>
      %81 = arith.select %79, %47, %80 : vector<1x256xi1>, vector<1x256xf32>
      %cst_34 = arith.constant dense<0x7F800000> : vector<1xf32>
      %82 = vector.multi_reduction <minimumf>, %81, %cst_34 [1] : vector<1x256xf32> to vector<1xf32>
      %83 = vector.shape_cast %82 : vector<1xf32> to vector<1x1xf32>
      %84 = vector.broadcast %83 : vector<1x1xf32> to vector<1x256xf32>
      %85 = arith.cmpf oeq, %47, %84 : vector<1x256xf32>
      %86 = arith.extui %85 : vector<1x256xi1> to vector<1x256xi32>
      %87 = arith.sitofp %86 : vector<1x256xi32> to vector<1x256xf32>
      %88 = arith.mulf %87, %39 : vector<1x256xf32>
      %cst_35 = arith.constant dense<0.000000e+00> : vector<1xf32>
      %89 = vector.multi_reduction <add>, %88, %cst_35 [1] : vector<1x256xf32> to vector<1xf32>
      %90 = vector.shape_cast %89 : vector<1xf32> to vector<1x1xf32>
      %91 = arith.mulf %87, %40 : vector<1x256xf32>
      %cst_36 = arith.constant dense<0.000000e+00> : vector<1xf32>
      %92 = vector.multi_reduction <add>, %91, %cst_36 [1] : vector<1x256xf32> to vector<1xf32>
      %93 = vector.shape_cast %92 : vector<1xf32> to vector<1x1xf32>
      %94 = arith.mulf %87, %41 : vector<1x256xf32>
      %cst_37 = arith.constant dense<0.000000e+00> : vector<1xf32>
      %95 = vector.multi_reduction <add>, %94, %cst_37 [1] : vector<1x256xf32> to vector<1xf32>
      %96 = vector.shape_cast %95 : vector<1xf32> to vector<1x1xf32>
      %97 = arith.mulf %87, %42 : vector<1x256xf32>
      %cst_38 = arith.constant dense<0.000000e+00> : vector<1xf32>
      %98 = vector.multi_reduction <add>, %97, %cst_38 [1] : vector<1x256xf32> to vector<1xf32>
      %99 = vector.shape_cast %98 : vector<1xf32> to vector<1x1xf32>
      %100 = arith.mulf %87, %45 : vector<1x256xf32>
      %cst_39 = arith.constant dense<0.000000e+00> : vector<1xf32>
      %101 = vector.multi_reduction <add>, %100, %cst_39 [1] : vector<1x256xf32> to vector<1xf32>
      %102 = vector.shape_cast %101 : vector<1xf32> to vector<1x1xf32>
      %103 = vector.broadcast %96 : vector<1x1xf32> to vector<1x256xf32>
      %104 = arith.minimumf %103, %41 : vector<1x256xf32>
      %105 = vector.broadcast %90 : vector<1x1xf32> to vector<1x256xf32>
      %106 = arith.maximumf %105, %39 : vector<1x256xf32>
      %107 = arith.subf %104, %106 : vector<1x256xf32>
      %cst_40 = arith.constant 0.000000e+00 : f32
      %108 = vector.broadcast %cst_40 : f32 to vector<1x256xf32>
      %109 = arith.maximumf %107, %108 : vector<1x256xf32>
      %110 = vector.broadcast %99 : vector<1x1xf32> to vector<1x256xf32>
      %111 = arith.minimumf %110, %42 : vector<1x256xf32>
      %112 = vector.broadcast %93 : vector<1x1xf32> to vector<1x256xf32>
      %113 = arith.maximumf %112, %40 : vector<1x256xf32>
      %114 = arith.subf %111, %113 : vector<1x256xf32>
      %cst_41 = arith.constant 0.000000e+00 : f32
      %115 = vector.broadcast %cst_41 : f32 to vector<1x256xf32>
      %116 = arith.maximumf %114, %115 : vector<1x256xf32>
      %117 = arith.mulf %109, %116 : vector<1x256xf32>
      %118 = vector.broadcast %102 : vector<1x1xf32> to vector<1x256xf32>
      %119 = arith.addf %118, %45 : vector<1x256xf32>
      %120 = arith.subf %119, %117 : vector<1x256xf32>
      %121 = arith.divf %117, %120 : vector<1x256xf32>
      %cst_42 = arith.constant 4.500000e-01 : f32
      %122 = vector.broadcast %cst_42 : f32 to vector<1x256xf32>
      %123 = arith.cmpf ogt, %121, %122 : vector<1x256xf32>
      %124 = arith.ori %85, %123 : vector<1x256xi1>
      %125 = vector.broadcast %77 : vector<1x1xi1> to vector<1x256xi1>
      %126 = arith.andi %125, %124 : vector<1x256xi1>
      %cst_43 = arith.constant -1.000000e+00 : f32
      %127 = vector.broadcast %cst_43 : f32 to vector<1x256xf32>
      %128 = arith.select %126, %127, %arg5 : vector<1x256xi1>, vector<1x256xf32>
      %129 = vector.broadcast %77 : vector<1x1xi1> to vector<1x256xi1>
      %130 = arith.andi %129, %85 : vector<1x256xi1>
      %131 = vector.shape_cast %arg7 : vector<1x1xi32> to vector<1x1xi32>
      %132 = vector.broadcast %131 : vector<1x1xi32> to vector<1x256xi32>
      %133 = arith.select %130, %132, %arg6 : vector<1x256xi1>, vector<1x256xi32>
      %134 = arith.extui %77 : vector<1x1xi1> to vector<1x1xi32>
      %135 = arith.addi %arg7, %134 : vector<1x1xi32>
      scf.yield %128, %133, %135 : vector<1x256xf32>, vector<1x256xi32>, vector<1x1xi32>
    }
    %c0_14 = arith.constant 0 : index
    %c0_15 = arith.constant 0 : index
    %54 = vector.load %arg3[%c0_14, %c0_15] : memref<8x256xf32, #tpu.memory_space<vmem>>, vector<1x256xf32>
    tpu.vector_store %arg3[%c0_14, %c0_15], %22 {strides = array<i32>} : memref<8x256xf32, #tpu.memory_space<vmem>>, vector<1x256xf32>,
    %c1 = arith.constant 1 : index
    %c0_16 = arith.constant 0 : index
    %55 = vector.load %arg3[%c1, %c0_16] : memref<8x256xf32, #tpu.memory_space<vmem>>, vector<1x256xf32>
    tpu.vector_store %arg3[%c1, %c0_16], %25 {strides = array<i32>} : memref<8x256xf32, #tpu.memory_space<vmem>>, vector<1x256xf32>,
    %c2 = arith.constant 2 : index
    %c0_17 = arith.constant 0 : index
    %56 = vector.load %arg3[%c2, %c0_17] : memref<8x256xf32, #tpu.memory_space<vmem>>, vector<1x256xf32>
    tpu.vector_store %arg3[%c2, %c0_17], %28 {strides = array<i32>} : memref<8x256xf32, #tpu.memory_space<vmem>>, vector<1x256xf32>,
    %c3 = arith.constant 3 : index
    %c0_18 = arith.constant 0 : index
    %57 = vector.load %arg3[%c3, %c0_18] : memref<8x256xf32, #tpu.memory_space<vmem>>, vector<1x256xf32>
    tpu.vector_store %arg3[%c3, %c0_18], %31 {strides = array<i32>} : memref<8x256xf32, #tpu.memory_space<vmem>>, vector<1x256xf32>,
    %c4 = arith.constant 4 : index
    %c0_19 = arith.constant 0 : index
    %58 = vector.load %arg3[%c4, %c0_19] : memref<8x256xf32, #tpu.memory_space<vmem>>, vector<1x256xf32>
    tpu.vector_store %arg3[%c4, %c0_19], %11 {strides = array<i32>} : memref<8x256xf32, #tpu.memory_space<vmem>>, vector<1x256xf32>,
    %c5 = arith.constant 5 : index
    %c0_20 = arith.constant 0 : index
    %59 = vector.load %arg3[%c5, %c0_20] : memref<8x256xf32, #tpu.memory_space<vmem>>, vector<1x256xf32>
    tpu.vector_store %arg3[%c5, %c0_20], %19 {strides = array<i32>} : memref<8x256xf32, #tpu.memory_space<vmem>>, vector<1x256xf32>,
    %cst_21 = arith.constant 1.000000e+00 : f32
    %60 = vector.broadcast %cst_21 : f32 to vector<1x256xf32>
    %c6 = arith.constant 6 : index
    %c0_22 = arith.constant 0 : index
    %61 = vector.load %arg3[%c6, %c0_22] : memref<8x256xf32, #tpu.memory_space<vmem>>, vector<1x256xf32>
    tpu.vector_store %arg3[%c6, %c0_22], %60 {strides = array<i32>} : memref<8x256xf32, #tpu.memory_space<vmem>>, vector<1x256xf32>,
    %cst_23 = arith.constant 0.000000e+00 : f32
    %62 = vector.broadcast %cst_23 : f32 to vector<1x256xf32>
    %c7 = arith.constant 7 : index
    %c0_24 = arith.constant 0 : index
    %63 = vector.load %arg3[%c7, %c0_24] : memref<8x256xf32, #tpu.memory_space<vmem>>, vector<1x256xf32>
    tpu.vector_store %arg3[%c7, %c0_24], %62 {strides = array<i32>} : memref<8x256xf32, #tpu.memory_space<vmem>>, vector<1x256xf32>,
    %64 = tpu.iota {dimensions = array<i32: 0>} : vector<256x256xi32>
    %65 = vector.broadcast %53#1 : vector<1x256xi32> to vector<256x256xi32>
    %66 = arith.cmpi eq, %64, %65 : vector<256x256xi32>
    %67 = arith.extui %66 : vector<256x256xi1> to vector<256x256xi32>
    %68 = arith.sitofp %67 : vector<256x256xi32> to vector<256x256xf32>
    %c0_25 = arith.constant 0 : index
    %c0_26 = arith.constant 0 : index
    %69 = vector.load %arg3[%c0_25, %c0_26] : memref<8x256xf32, #tpu.memory_space<vmem>>, vector<8x256xf32>
    %cst_27 = arith.constant dense<0.000000e+00> : vector<8x256xf32>
    %70 = tpu.matmul %69, %68, %cst_27 {dimension_numbers = #tpu.dot_dimension_numbers<[1], [1], [0], [0], [0, 0, 1, 0], [], []>} : vector<8x256xf32>, vector<256x256xf32>, vector<8x256xf32> -> vector<8x256xf32>
    %c0_28 = arith.constant 0 : index
    %c0_29 = arith.constant 0 : index
    %c0_30 = arith.constant 0 : index
    %71 = vector.load %arg2[%c0_28, %c0_29, %c0_30] : memref<1x8x256xf32, #tpu.memory_space<vmem>>, vector<1x8x256xf32>
    %72 = vector.shape_cast %71 : vector<1x8x256xf32> to vector<8x256xf32>
    %73 = vector.shape_cast %70 : vector<8x256xf32> to vector<1x8x256xf32>
    tpu.vector_store %arg2[%c0_28, %c0_29, %c0_30], %73 {strides = array<i32>} : memref<1x8x256xf32, #tpu.memory_space<vmem>>, vector<1x8x256xf32>,
    return
  }
  func.func @transform_0(%arg0: i32) -> (i32, i32, i32) {
    %c0_i32 = arith.constant 0 : i32
    %c0_i32_0 = arith.constant 0 : i32
    %c0_i32_1 = arith.constant 0 : i32
    return %arg0, %c0_i32, %c0_i32_0 : i32, i32, i32
  }
  func.func @transform_1(%arg0: i32) -> (i32, i32, i32) {
    %c0_i32 = arith.constant 0 : i32
    %c0_i32_0 = arith.constant 0 : i32
    %c0_i32_1 = arith.constant 0 : i32
    return %arg0, %c0_i32, %c0_i32_0 : i32, i32, i32
  }
}

</mosaic_0001>

<bundles_post_ra>
// kernel: tpu_custom_call.1
= control target key start
LH: loop header
LB: loop body
LE: loop exit
PB: predicated region body
PF: predicated region fallthrough
CT: control target
= control target key end

     0   :  { %6 = vsyncpa [#allocation4], 0  ;;  %s1856_s0 = inlined_call_operand.hbm [shape: f32[2,8,256], index: 0, kind: input, shape index: {}]   ;;  %s1857_s1 = inlined_call_operand.hbm [shape: f32[2,8,256], index: 1, kind: output, shape index: {}]  }
   0x1   :  { %8 = vsyncpa [#allocation4 + $0x1], 0 }
   0x2   :  { %9 = vsyncpa [#allocation5], 0 }
   0x3   :  { %11 = vsyncpa [#allocation5 + $0x1], 0  ;;  %s1296_s6 = smov 0   ;;  %s1298_s7 = smov 0  }
   0x4   :  { %s1300_s8 = smov 0   ;;  %s1302_s9 = smov 0  }
   0x5 LB: > { %s1317_s10 = sadd.s32 4294967295, %s1253_s9   ;;  %s888_s11 = sadd.s32 4294967294, %s1253_s9   ;;  %s1253_s9 = sphi %s1302_s9, %s1889_s9   ;;  %s1249_s8 = sphi %s1300_s8, %s1888_s8   ;;  %s1245_s7 = sphi %s1298_s7, %s1887_s7   ;;  %s1241_s6 = sphi %s1296_s6, %s1886_s6  }
   0x6   : > { %s1321_s12 = sadd.s32 1, %s1253_s9   ;;  %s24_s13 = sadd.s32 1, %s1249_s8 }
   0x7   : > { %s21_s14 = ssub.s32 %s1253_s9, %s1321_s12  ;;  %p31_p0 = scmp.ne.s32.totalorder %s1249_s8, %s1245_s7 }
   0x8   : > { %p22_p1 = scmp.eq.s32.totalorder %s21_s14, 0  ;;  %p32_p2 = scmp.eq.s32.totalorder %s1253_s9, 0 }
   0x9   : > { %p37_p3 = scmp.ne.s32.totalorder %s1245_s7, %s1241_s6  ;;  %p38_p4 = scmp.eq.s32.totalorder %s1317_s10, 0 }
   0xa   : > { %s1333_s15 = scalar_select %p22_p1, %s1249_s8, %s24_s13  }
   0xb   : > { %p1335_p5 = por %p32_p2, %p31_p0  ;;  %p1339_p6 = por %p38_p4, %p37_p3 }
   0xc   : > { %p61_p7 = scmp.eq.s32.totalorder %s1317_s10, 1  ;;  %p67_p8 = scmp.eq.s32.totalorder %s888_s11, 1 }
   0xd   : > { %s1861_s17 = scalar_select %p1339_p6, 1, 0 }
   0xe   : > { %p1046_p10 = scmp.lt.s32.totalorder %s1253_s9, 2  ;;  %p1346_p11 = por %p61_p7, %p31_p0 }
   0xf   : > { %p1350_p12 = por %p67_p8, %p37_p3  ;;  %s87_s20 = sand.u32 1, %s1249_s8  }
  0x10   : > { %s1862_s18 = scalar_select %p1346_p11, 1, 0 }
  0x11   : > { %s1863_s19 = scalar_select %p1350_p12, 1, 0 }
  0x12   : > { %s1032_s21 = sshll.u32 %s1253_s9, 8  ;;  %s891_s22 = sshll.u32 %s87_s20, 4 }
  0x13   : > { %s1359_s25 = scalar_lea.hbm %s1856_s0, %s1032_s21  ;;  %s91_s26 = scalar_lea.vmem [#allocation3], %s891_s22 }
  0x14   : > { %s99_s27 = sshll.u32 %s91_s26, 4  ;;  %p1363_p13 = pnand %p1046_p10, %p1335_p5  ;;  %s1367_s27 = int_to_ptr.vmem [resolvable:$true] %s99_s27 }
  0x15   : > { %s88_s29 = scalar_lea.sflag [#allocation4], %s87_s20  ;;  %s1137_s30 = scalar_lea.hbm %s1359_s25, 256 }
  0x16   : > { %p1138_p2 = scmp.ne.s32.totalorder %s1359_s25, %s1137_s30  ;;  %p1139_p3 = pneg %p1363_p13 }
  0x17   : > { %s1142_s4 = scalar_lea.hbm %s1856_s0, 512  ;;  %p1143_p5 = scmp.lt.s32.totalorder %s1359_s25, %s1856_s0 }
  0x18   : > { %p1140_p4 = pnand %p1139_p3, %p1138_p2  ;;  %p1144_p8 = scmp.lt.s32.totalorder %s1142_s4, %s1137_s30 }
  0x1a   : > { %p1141_p7 = pneg %p1140_p4  ;;  %p1145_p10 = por %p1144_p8, %p1143_p5 }
  0x1c   : > { %p1146_p9 = pnand %p1145_p10, %p1141_p7 }
  0x1e   : > { %1149 = shalt.err (!%p1146_p9)
}
  0x1f   : > { %s1150_s13 = scalar_lea.vmem %s1367_s27, 256  ;;  %s1279_s14 = smov [#allocation3]  }
  0x20   : > { %p1151_p0 = scmp.ne.s32.totalorder %s1367_s27, %s1150_s13  ;;  %s1155_s16 = sshll.u32 %s1279_s14, 4  ;;  %s1156_s16 = int_to_ptr.vmem [resolvable:$false] %s1155_s16 }
  0x21   : > { %s1157_s20 = scalar_lea.vmem %s1156_s16, 512  ;;  %p1158_p4 = scmp.lt.s32.totalorder %s1367_s27, %s1156_s16 }
  0x22   : > { %p1153_p1 = pnand %p1151_p0, %p1139_p3  ;;  %p1159_p12 = scmp.lt.s32.totalorder %s1157_s20, %s1150_s13 }
  0x24   : > { %p1154_p2 = pneg %p1153_p1  ;;  %p1160_p11 = por %p1159_p12, %p1158_p4 }
  0x26   : > { %p1161_p6 = pnand %p1160_p11, %p1154_p2 }
  0x28   : > { %1164 = shalt.err (!%p1161_p6)
}
  0x29   : > { %1041 = dma.hbm_to_vmem [thread:$0]  (!%p1363_p13), %s1359_s25, 256, %s1367_s27, %s88_s29  }
  0x2a   : > { %p1865_p9 = scmp.lt.s32.totalorder %s1253_s9, 3  ;;  %p1866_p7 = scmp.ge.s32.totalorder %s1253_s9, 1 }
  0x2c   : > { %p105_p0 = pnand %p1866_p7, %p1865_p9 }
  0x2d   : > { %s1394_s21 = sand.u32 (!%p105_p0), 1, %s1245_s7   ;;  %p1867_p6 = scmp.ne.s32.totalorder (!%p105_p0), %s1861_s17, 0 }
  0x2e   : > { %108 = sbr.rel (%p105_p0) target bundleno = 900 (0x384), region = 24  ;;  %s895_s22 = sshll.u32 (!%p105_p0), %s1394_s21, 4 }
  0x2f   : > { %s111_s23 = scalar_lea.sflag (!%p105_p0), [#allocation4], %s1394_s21  ;;  %s114_s24 = scalar_lea.vmem (!%p105_p0), [#allocation3], %s895_s22 }
  0x33   : > { %1232 = dma.done.wait (%p1867_p6), %s111_s23, 256  }
  0x34   : > { %1234 = vsyncadd (%p1867_p6), %s111_s23, 4294967040  ;;  %v135_v0 = vlaneseq  ;;  %v133_v7 = vld [vmem:[%s114_s24] sm:$0xff]  ;;  %v134_v8 = vld [vmem:[%s114_s24 + $0x8] sm:$0xff]  ;;  %vm145_vm0 = vcmask 1047557   ;;  %s1483_s17 = scalar_lea.vmem [#allocation6], %s895_s22  ;;  %s1495_s25 = smov 0  }
  0x35   : > { %vm196_vm1 = vcmp.gt.f32.partialorder %v133_v7, 0.25  ;;  %vm197_vm2 = vcmp.gt.f32.partialorder %v134_v8, 0.25  ;;  %v184_v39 = vmul.f32 0.5, %v133_v7  ;;  %v185_v40 = vmul.f32 0.5, %v134_v8 }
  0x36   : > { %v1405_v1 = vshrl.u32 %v135_v0, 7  ;;  %v1408_v2 = vand.u32 127, %v135_v0 }
  0x37   : > { %v188_v45 = vrot.slane %v184_v39, 2  ;;  %v189_v46 = vrot.slane %v185_v40, 2 }
  0x38   : > { %v1411_v3 = vsub.s32 4, %v1405_v1  ;;  %v1414_v4 = vadd.s32 128, %v1408_v2  ;;  %v221_v5 = vcvt.s32.f32 %v1408_v2  ;;  %v162_v21 = vcvt.s32.f32 %v1405_v1 }
  0x39   : > { %v1447_v51 = vsub.f32 %v133_v7, %v188_v45  ;;  %v1449_v52 = vsub.f32 %v134_v8, %v189_v46  ;;  %v1455_v55 = vadd.f32 %v188_v45, %v133_v7  ;;  %v1457_v56 = vadd.f32 %v189_v46, %v134_v8 }
  0x3a   : > { %v222_v6 = vcvt.s32.f32 %v1414_v4  ;;  %v138_v9 = vrot.slane %v133_v7, %v1411_v3  ;;  %v142_v10 = vrot.slane %v134_v8, %v1411_v3  ;;  %v166_v26 = vrot.slane %v162_v21, 3 }
  0x3c   : > { %v143_v11 = vmul.f32 %v138_v9, %v133_v7  ;;  %v144_v12 = vmul.f32 %v142_v10, %v134_v8 }
  0x3e   : > { %v146_v13 = vsel %vm145_vm0, %v143_v11, -inf  ;;  %v153_v14 = vsel %vm145_vm0, %v144_v12, -inf }
  0x3f   : > { %v147_v15 = vrot.slane %v146_v13, 4  ;;  %v154_v16 = vrot.slane %v153_v14, 4 }
  0x41   : > { %v148_v17 = vmax.f32 %v146_v13, %v147_v15  ;;  %v155_v18 = vmax.f32 %v153_v14, %v154_v16  ;;  %v1487_v13 = vmov 256   ;;  %v1489_v14 = vmov 256  }
  0x43   : > { %v149_v19 = vrot.slane %v148_v17, 2  ;;  %v156_v20 = vrot.slane %v155_v18, 2 }
  0x45   : > { %v150_v22 = vmax.f32 %v148_v17, %v149_v19  ;;  %v157_v23 = vmax.f32 %v155_v18, %v156_v20 }
  0x47   : > { %v151_v24 = vrot.slane %v150_v22, 1  ;;  %v158_v25 = vrot.slane %v157_v23, 1 }
  0x49   : > { %v1423_v27 = vmax.f32 %v150_v22, %v151_v24  ;;  %v1425_v28 = vmax.f32 %v157_v23, %v158_v25 }
  0x4b   : > { %vm163_vm3 = vcmp.ge.f32.partialorder %v143_v11, %v1423_v27  ;;  %vm164_vm4 = vcmp.ge.f32.partialorder %v144_v12, %v1425_v28  ;;  %vm198_vm5 = vcmp.gt.f32.partialorder %v1423_v27, 0.25  ;;  %vm199_vm6 = vcmp.gt.f32.partialorder %v1425_v28, 0.25 }
  0x4c   : > { %v168_v29 = vsel %vm163_vm3, %v166_v26, 3.0  ;;  %v169_v30 = vsel %vm164_vm4, %v166_v26, 3.0  ;;  %vm1431_vm7 = vmand %vm196_vm1, %vm198_vm5  ;;  %v1485_v12 = vmov 0  }
  0x4d   : > { %v170_v32 = vsel %vm145_vm0, %v168_v29, inf  ;;  %v177_v33 = vsel %vm145_vm0, %v169_v30, inf  ;;  %vm1437_vm8 = vmand %vm197_vm2, %vm199_vm6  ;;  %v223_v35 = vsel %vm1431_vm7, %v1423_v27, -1.0  }
  0x4e   : > { %v171_v36 = vrot.slane %v170_v32, 4  ;;  %v178_v37 = vrot.slane %v177_v33, 4  ;;  %v224_v38 = vsel %vm1437_vm8, %v1425_v28, -1.0  }
  0x50   : > { %v172_v41 = vmin.f32 %v170_v32, %v171_v36  ;;  %v179_v42 = vmin.f32 %v177_v33, %v178_v37 }
  0x52   : > { %v173_v43 = vrot.slane %v172_v41, 2  ;;  %v180_v44 = vrot.slane %v179_v42, 2 }
  0x54   : > { %v174_v47 = vmin.f32 %v172_v41, %v173_v43  ;;  %v181_v48 = vmin.f32 %v179_v42, %v180_v44 }
  0x56   : > { %v175_v49 = vrot.slane %v174_v47, 1  ;;  %v182_v50 = vrot.slane %v181_v48, 1 }
  0x58   : > { %v1451_v53 = vmin.f32 %v174_v47, %v175_v49  ;;  %v1453_v54 = vmin.f32 %v181_v48, %v182_v50 }
  0x5a   : > { %v202_v57 = vmul.f32 4096.0, %v1451_v53  ;;  %v203_v58 = vmul.f32 4096.0, %v1453_v54 }
  0x5c   : > { %v1462_v59 = vadd.f32 %v202_v57, %v1447_v51  ;;  %v1465_v60 = vadd.f32 %v203_v58, %v1449_v52  ;;  %v1468_v61 = vadd.f32 %v202_v57, %v1455_v55  ;;  %v1471_v62 = vadd.f32 %v203_v58, %v1457_v56 }
  0x5e   : > { %v208_v63 = vsub.f32 %v1468_v61, %v1462_v59  ;;  %v209_v7 = vsub.f32 %v1471_v62, %v1465_v60 }
  0x60   : > { %v212_v8 = vrot.slane %v208_v63, 1  ;;  %v213_v9 = vrot.slane %v209_v7, 1 }
  0x62   : > { %v1477_v10 = vmul.f32 %v212_v8, %v208_v63  ;;  %v1479_v11 = vmul.f32 %v213_v9, %v209_v7 }
  0x63 LB: >> { %vm236_vm9 = vcmask 1044484   ;;  %v1280_v19 = vmov 0   ;;  %v284_v29 = vrot.slane %v1468_v61, 4  ;;  %v285_v30 = vrot.slane %v1471_v62, 4  ;;  %s230_s25 = sadd.s32 1, %s1277_s25   ;;  %s1277_s25 = sphi %s1495_s25, %s230_s25   ;;  %v1273_v35 = vphi %v223_v35, %v353_v35   ;;  %v1269_v38 = vphi %v224_v38, %v354_v38   ;;  %v1265_v14 = vphi %v1489_v14, %v1880_v14   ;;  %v1261_v13 = vphi %v1487_v13, %v1879_v13   ;;  %v1257_v12 = vphi %v1485_v12, %v1878_v12  }
  0x64   : >> { %v237_v15 = vsel %vm236_vm9, %v1273_v35, -inf  ;;  %v238_v16 = vsel %vm236_vm9, %v1269_v38, -inf  ;;  %v260_v31 = vrot.slane %v1462_v59, 4  ;;  %v261_v33 = vrot.slane %v1465_v60, 4  ;;  %p227_p11 = scmp.ge.s32.totalorder %s230_s25, 256  }
  0x65   : >> { %v239_v17 = vmax.f32 %v237_v15, %v238_v16  ;;  %v308_v34 = vrot.slane %v1477_v10, 4  ;;  %v309_v36 = vrot.slane %v1479_v11, 4  ;;  %v271_v40 = vrot.slane %v1462_v59, 5  ;;  %s1033_s26 = sshll.u32 (%p227_p11), %s1317_s10, 8  ;;  %s798_s27 = sshll.u32 (%p227_p11), %s1483_s17, 4  ;;  %s799_s27 = int_to_ptr.vmem [resolvable:$true] %s798_s27 }
  0x66   : >> { %v272_v41 = vrot.slane %v1465_v60, 5  ;;  %v1281_v42 = vmov 0.0   ;;  %v295_v45 = vrot.slane %v1468_v61, 5  ;;  %v296_v46 = vrot.slane %v1471_v62, 5  ;;  %s1818_s30 = scalar_lea.hbm (%p227_p11), %s1857_s1, %s1033_s26  ;;  %s784_s2 = scalar_lea.sflag (%p227_p11), [#allocation5], %s1394_s21 }
  0x67   : >> { %240 = vmax.xlane.f32.xlu0 %v239_v17  ;;  %v1282_v37 = vmov (%p227_p11), 1.0   ;;  %v488_v2 = vadd.s32 (%p227_p11), 96, %v1405_v1  ;;  %v486_v4 = vadd.s32 (%p227_p11), 80, %v1405_v1  ;;  %v483_v61 = vadd.s32 (%p227_p11), 56, %v1405_v1  ;;  %s1165_s3 = scalar_lea.vmem (%p227_p11), %s799_s27, 256  ;;  %p1883_p13 = scmp.ne.s32.totalorder (%p227_p11), %s1862_s18, 0 }
  0x68   : > { %v362_v62 = vcombine.low (%p227_p11), %v1447_v51, %v1449_v52  ;;  %v398_v10 = vcombine.low (%p227_p11), %v1455_v55, %v1457_v56  ;;  %v431_v11 = vcombine.low (%p227_p11), %v1423_v27, %v1425_v28  ;;  %v452_v39 = vcombine.low (%p227_p11), %v1451_v53, %v1453_v54  ;;  %p1166_p12 = scmp.ne.s32.totalorder (%p227_p11), %s799_s27, %s1165_s3  ;;  %s1285_s4 = smov (%p227_p11), [#allocation6]  }
  0x69   : > { %v482_v52 = vadd.s32 (%p227_p11), 48, %v1405_v1  ;;  %s1169_s5 = sshll.u32 (%p227_p11), %s1285_s4, 4  ;;  %s1170_s5 = int_to_ptr.vmem [resolvable:$false] %s1169_s5 }
  0x6a   : > { %p1167_p1 = pnand (%p227_p11), %p1166_p12, %p1883_p13  ;;  %s1171_s10 = scalar_lea.vmem (%p227_p11), %s1170_s5, 512 }
  0x6b   : > { %p1172_p5 = scmp.lt.s32.totalorder (%p227_p11), %s799_s27, %s1170_s5  ;;  %p1173_p8 = scmp.lt.s32.totalorder (%p227_p11), %s1171_s10, %s1165_s3 }
  0x6c   : > { %p1168_p3 = pneg (%p227_p11), %p1167_p1 }
  0x6d   : > { %p1174_p10 = por (%p227_p11), %p1173_p8, %p1172_p5 }
  0x6f   : > { %p1175_p2 = pnand (%p227_p11), %p1174_p10, %p1168_p3 }
  0xf0   : >> { %v1513_v18 = vpop.xlane.xlu0 %240 }
  0xf1   : >> { %vm242_vm10 = vcmp.gt.f32.partialorder %v1513_v18, 0.0  ;;  %vm243_vm11 = vcmp.ge.f32.partialorder %v1273_v35, %v1513_v18  ;;  %vm244_vm12 = vcmp.ge.f32.partialorder %v1269_v38, %v1513_v18  ;;  %v491_v18 = vadd.s32 (%p227_p11), 120, %v1405_v1 }
  0xf2   : >> { %v349_v20 = vsel %vm242_vm10, 1, %v1280_v19  ;;  %v245_v21 = vsel %vm243_vm11, %v221_v5, 256.0  ;;  %v246_v22 = vsel %vm244_vm12, %v222_v6, 256.0 }
  0xf3   : >> { %v247_v23 = vsel %vm236_vm9, %v245_v21, inf  ;;  %v248_v24 = vsel %vm236_vm9, %v246_v22, inf  ;;  %v1528_v25 = vadd.s32 %v1257_v12, %v349_v20  }
  0xf4   : >> { %v249_v26 = vmin.f32 %v247_v23, %v248_v24 }
  0xf6   : >> { %250 = vmin.xlane.f32.xlu0 %v249_v26 }
 0x17f   : >> { %v251_v32 = vpop.xlane.xlu0 %250 }
 0x180   : >> { %vm1538_vm13 = vcmp.eq.f32.partialorder %v221_v5, %v251_v32  ;;  %vm1544_vm14 = vcmp.eq.f32.partialorder %v222_v6, %v251_v32  ;;  %v485_v5 = vadd.s32 (%p227_p11), 72, %v1405_v1  ;;  %v484_v6 = vadd.s32 (%p227_p11), 64, %v1405_v1 }
 0x181   : >> { %v897_v43 = vsel %vm1538_vm13, 1.0, %v1281_v42  ;;  %v898_v44 = vsel %vm1544_vm14, 1.0, %v1281_v42  ;;  %vm355_vm15 = vmand %vm242_vm10, %vm1538_vm13 }
 0x182   : >> { %vm356_vm0 = vmand %vm242_vm10, %vm1544_vm14  ;;  %v1564_v14 = vsel %vm355_vm15, %v1257_v12, %v1265_v14   ;;  %v288_v48 = vmul.f32 %v897_v43, %v284_v29  ;;  %v289_v49 = vmul.f32 %v898_v44, %v285_v30  ;;  %v264_v50 = vmul.f32 %v897_v43, %v260_v31 }
 0x183   : >> { %v1876_v47 = vmov %v1564_v14  ;;  %v1566_v13 = vsel %vm356_vm0, %v1257_v12, %v1261_v13   ;;  %v265_v58 = vmul.f32 %v898_v44, %v261_v33  ;;  %v312_v63 = vmul.f32 %v897_v43, %v308_v34 }
 0x184   : >> { %v1877_v57 = vmov %v1566_v13  ;;  %v313_v7 = vmul.f32 %v898_v44, %v309_v36  ;;  %v290_v8 = vsel %vm236_vm9, %v288_v48, 0.0  ;;  %v291_v9 = vsel %vm236_vm9, %v289_v49, 0.0 }
 0x185   : >> { %v266_v15 = vsel %vm236_vm9, %v264_v50, 0.0  ;;  %v275_v16 = vmul.f32 %v897_v43, %v271_v40  ;;  %v292_v14 = vadd.f32 %v291_v9, %v290_v8  ;;  %v267_v17 = vsel %vm236_vm9, %v265_v58, 0.0 }
 0x186   : >> { %v268_v19 = vadd.f32 %v267_v17, %v266_v15  ;;  %v314_v12 = vsel %vm236_vm9, %v312_v63, 0.0  ;;  %v315_v13 = vsel %vm236_vm9, %v313_v7, 0.0  ;;  %v276_v20 = vmul.f32 %v898_v44, %v272_v41 }
 0x187   : >> { %293 = vadd.xlane.f32.xlu0 %v292_v14  ;;  %v277_v21 = vsel %vm236_vm9, %v275_v16, 0.0  ;;  %v299_v22 = vmul.f32 %v897_v43, %v295_v45  ;;  %v300_v23 = vmul.f32 %v898_v44, %v296_v46  ;;  %v316_v26 = vadd.f32 %v315_v13, %v314_v12 }
 0x188   : >> { %269 = vadd.xlane.f32.xlu1 %v268_v19  ;;  %v278_v24 = vsel %vm236_vm9, %v276_v20, 0.0 }
 0x189   : >> { %v279_v32 = vadd.f32 %v278_v24, %v277_v21  ;;  %v301_v42 = vsel %vm236_vm9, %v299_v22, 0.0  ;;  %v302_v48 = vsel %vm236_vm9, %v300_v23, 0.0 }
 0x18a   : >> { %v303_v49 = vadd.f32 %v302_v48, %v301_v42 }
 0x18b   : >> { %317 = vadd.xlane.f32.xlu0 %v316_v26 }
 0x18c   : >> { %280 = vadd.xlane.f32.xlu1 %v279_v32 }
 0x190   : >> { %304 = vadd.xlane.f32.xlu1 %v303_v49 }
 0x210   : >> { %v294_v58 = vpop.xlane.xlu0 %293 }
 0x211   : >> { %v270_v50 = vpop.xlane.xlu1 %269  ;;  %v319_v63 = vmin.f32 %v294_v58, %v284_v29  ;;  %v320_v7 = vmin.f32 %v294_v58, %v285_v30  ;;  %v481_v58 = vadd.s32 (%p227_p11), 40, %v1405_v1 }
 0x212   : >> { %v321_v8 = vmax.f32 %v270_v50, %v260_v31  ;;  %v322_v43 = vmax.f32 %v270_v50, %v261_v33 }
 0x214   : >> { %v323_v9 = vsub.f32 %v319_v63, %v321_v8  ;;  %v324_v15 = vsub.f32 %v320_v7, %v322_v43  ;;  %v318_v21 = vpop.xlane.xlu0 %317  ;;  %v480_v8 = vadd.s32 (%p227_p11), 32, %v1405_v1  ;;  %v479_v43 = vadd.s32 (%p227_p11), 24, %v1405_v1 }
 0x215   : >> { %v281_v44 = vpop.xlane.xlu1 %280  ;;  %v337_v29 = vadd.f32 %v318_v21, %v308_v34  ;;  %v338_v30 = vadd.f32 %v318_v21, %v309_v36  ;;  %v1615_v34 = vrot.slane (%p227_p11), %v1877_v57, %v1411_v3  ;;  %v490_v36 = vadd.s32 (%p227_p11), 112, %v1405_v1 }
 0x216   : >> { %v329_v14 = vmax.f32 %v281_v44, %v271_v40  ;;  %v330_v17 = vmax.f32 %v281_v44, %v272_v41  ;;  %v325_v22 = vmax.f32 %v323_v9, 0.0  ;;  %v326_v23 = vmax.f32 %v324_v15, 0.0 }
 0x217   : > { %vm547_vm7 = vcmp.eq.s32.totalorder (%p227_p11), %v491_v18, %v1615_v34  ;;  %vm545_vm9 = vcmp.eq.s32.totalorder (%p227_p11), %v490_v36, %v1615_v34  ;;  %v478_v9 = vadd.s32 (%p227_p11), 16, %v1405_v1  ;;  %v477_v15 = vadd.s32 (%p227_p11), 8, %v1405_v1 }
 0x218   : > { %963 = vmatprep.subr.msk.mxu0 (%p227_p11), %vm547_vm7, %v1282_v37  ;;  %v500_v21 = vadd.s32 (%p227_p11), 192, %v1405_v1 }
 0x219   : >> { %v305_v16 = vpop.xlane.xlu1 %304 }
 0x21a   : >> { %v327_v19 = vmin.f32 %v305_v16, %v295_v45  ;;  %v328_v12 = vmin.f32 %v305_v16, %v296_v46  ;;  %v507_v16 = vadd.s32 (%p227_p11), 248, %v1405_v1 }
 0x21c   : >> { %v331_v13 = vsub.f32 %v327_v19, %v329_v14  ;;  %v332_v20 = vsub.f32 %v328_v12, %v330_v17  ;;  %v1878_v12 = vmov %v1528_v25  ;;  %v1880_v14 = vmov %v1876_v47 }
 0x21d   : > { %v1619_v25 = vrot.slane (%p227_p11), %v1876_v47, %v1411_v3  ;;  %v487_v3 = vadd.s32 (%p227_p11), 88, %v1405_v1  ;;  %v1284_v47 = vmov (%p227_p11), 0.0   ;;  %v506_v14 = vadd.s32 (%p227_p11), 240, %v1405_v1 }
 0x21e   : >> { %v333_v24 = vmax.f32 %v331_v13, 0.0  ;;  %v334_v26 = vmax.f32 %v332_v20, 0.0  ;;  %v1879_v13 = vmov %v1877_v57  ;;  %v505_v17 = vadd.s32 (%p227_p11), 232, %v1405_v1 }
 0x21f   : > { %vm546_vm8 = vcmp.eq.s32.totalorder (%p227_p11), %v491_v18, %v1619_v25  ;;  %vm539_vm15 = vcmp.eq.s32.totalorder (%p227_p11), %v487_v3, %v1615_v34  ;;  %vm538_vm0 = vcmp.eq.s32.totalorder (%p227_p11), %v487_v3, %v1619_v25  ;;  %vm532_vm7 = vcmp.eq.s32.totalorder (%p227_p11), %v484_v6, %v1619_v25 }
 0x220   : >> { %v335_v31 = vmul.f32 %v333_v24, %v325_v22  ;;  %v336_v33 = vmul.f32 %v334_v26, %v326_v23  ;;  %964 = vmatpush1.xpose.msk.msra.mxu0 (%p227_p11), %vm546_vm8, %v1282_v37  ;;  %vm531_vm8 = vcmp.eq.s32.totalorder (%p227_p11), %v483_v61, %v1615_v34  ;;  %v504_v19 = vadd.s32 (%p227_p11), 224, %v1405_v1 }
 0x221   : > { %965 = vmatprep.subr.msk.mxu0 (%p227_p11), %vm545_vm9, %v1282_v37  ;;  %vm530_vm9 = vcmp.eq.s32.totalorder (%p227_p11), %v483_v61, %v1619_v25  ;;  %v503_v12 = vadd.s32 (%p227_p11), 216, %v1405_v1  ;;  %v502_v13 = vadd.s32 (%p227_p11), 208, %v1405_v1  ;;  %v501_v20 = vadd.s32 (%p227_p11), 200, %v1405_v1 }
 0x222   : >> { %v339_v32 = vsub.f32 %v337_v29, %v335_v31  ;;  %v340_v40 = vsub.f32 %v338_v30, %v336_v33  ;;  %v499_v22 = vadd.s32 (%p227_p11), 184, %v1405_v1  ;;  %v498_v23 = vadd.s32 (%p227_p11), 176, %v1405_v1 }
 0x223   : > { %v497_v24 = vadd.s32 (%p227_p11), 168, %v1405_v1  ;;  %v496_v26 = vadd.s32 (%p227_p11), 160, %v1405_v1  ;;  %v495_v29 = vadd.s32 (%p227_p11), 152, %v1405_v1  ;;  %v494_v30 = vadd.s32 (%p227_p11), 144, %v1405_v1 }
 0x224   : >> { %1133 = vrcp.f32 %v339_v32 }
 0x225   : >> { %1135 = vrcp.f32 %v340_v40 }
 0x231   : >> { %v1134_v41 = vpop.eup %1133 }
 0x232   : >> { %v1136_v45 = vpop.eup %1135  ;;  %v342_v46 = vmul.f32 %v1134_v41, %v335_v31  ;;  %v493_v31 = vadd.s32 (%p227_p11), 136, %v1405_v1 }
 0x233   : >> { %v344_v42 = vmul.f32 %v1136_v45, %v336_v33  ;;  %v492_v33 = vadd.s32 (%p227_p11), 128, %v1405_v1 }
 0x234   : >> { %vm345_vm1 = vcmp.gt.f32.partialorder %v342_v46, 0.45 }
 0x235   : >> { %vm346_vm2 = vcmp.gt.f32.partialorder %v344_v42, 0.45  ;;  %vm347_vm3 = vmor %vm1538_vm13, %vm345_vm1  ;;  %229 = sbr.rel (!%p227_p11) target bundleno = 99 (0x63), region = 83  ;;  %vm541_vm13 = vcmp.eq.s32.totalorder (%p227_p11), %v488_v2, %v1615_v34  ;;  %vm537_vm1 = vcmp.eq.s32.totalorder (%p227_p11), %v486_v4, %v1615_v34 }
 0x236   : >> { %vm348_vm4 = vmor %vm1544_vm14, %vm346_vm2  ;;  %vm540_vm14 = vcmp.eq.s32.totalorder (%p227_p11), %v488_v2, %v1619_v25  ;;  %vm536_vm2 = vcmp.eq.s32.totalorder (%p227_p11), %v486_v4, %v1619_v25 }
 0x237   : >> { %vm351_vm5 = vmand %vm242_vm10, %vm347_vm3  ;;  %vm535_vm3 = vcmp.eq.s32.totalorder (%p227_p11), %v485_v5, %v1615_v34 }
 0x238   : >> { %vm352_vm6 = vmand %vm242_vm10, %vm348_vm4  ;;  %v353_v35 = vsel %vm351_vm5, -1.0, %v1273_v35   ;;  %vm544_vm10 = vcmp.eq.s32.totalorder (%p227_p11), %v490_v36, %v1619_v25  ;;  %vm534_vm4 = vcmp.eq.s32.totalorder (%p227_p11), %v485_v5, %v1619_v25  ;;  %vm1655_vm5 = vcmp.lt.s32.totalorder (%p227_p11), %v135_v0, 256 }
 0x239   : >> { %v354_v38 = vsel %vm352_vm6, -1.0, %v1269_v38   ;;  %v489_v35 = vadd.s32 (%p227_p11), 104, %v1405_v1  ;;  %966 = vmatpush1.xpose.msk.msra.mxu0 (%p227_p11), %vm544_vm10, %v1282_v37  ;;  %vm533_vm6 = vcmp.eq.s32.totalorder (%p227_p11), %v484_v6, %v1615_v34  ;;  %472 = vst.msk [vmem:[#allocation2 + $0x6] ss:$8 sm:$0x3] (%p227_p11), %vm1655_vm5, %v1282_v37  ;;  %vm529_vm10 = vcmp.eq.s32.totalorder (%p227_p11), %v482_v52, %v1615_v34 }
 0x23a   : > { %v1283_v38 = vmov 1966171168   ;;  %475 = vst.msk [vmem:[#allocation2 + $0x7] ss:$8 sm:$0x3] %vm1655_vm5, %v1284_v47 }
 0x23b   : > { %vm543_vm11 = vcmp.eq.s32.totalorder %v489_v35, %v1615_v34  ;;  %vm542_vm12 = vcmp.eq.s32.totalorder %v489_v35, %v1619_v25  ;;  %v364_v59 = vunpack.c.l.s4 %v1283_v38 }
 0x23c   : > { %967 = vmatprep.subr.msk.mxu0 %vm543_vm11, %v1282_v37  ;;  %vm528_vm11 = vcmp.eq.s32.totalorder %v482_v52, %v1619_v25 }
 0x23d   : > { %968 = vmatpush1.xpose.msk.msra.mxu0 %vm542_vm12, %v1282_v37  ;;  %v365_v0 = vunpack.c.0.s8 %v364_v59  ;;  %vm527_vm12 = vcmp.eq.s32.totalorder %v481_v58, %v1615_v34 }
 0x23e   : > { %969 = vmatprep.subr.msk.mxu0 %vm541_vm13, %v1282_v37  ;;  %vm526_vm13 = vcmp.eq.s32.totalorder %v481_v58, %v1619_v25 }
 0x23f   : > { %v368_v51 = vsub.s32 %v365_v0, %v1405_v1 }
 0x241   : > { %970 = vmatpush1.xpose.msk.msra.mxu0 %vm540_vm14, %v1282_v37  ;;  %v369_v27 = vrot.slane %v362_v62, %v368_v51  ;;  %v405_v28 = vrot.slane %v398_v10, %v368_v51  ;;  %v438_v55 = vrot.slane %v431_v11, %v368_v51  ;;  %v459_v53 = vrot.slane %v452_v39, %v368_v51 }
 0x242   : > { %971 = vmatprep.subr.msk.mxu0 %vm539_vm15, %v1282_v37  ;;  %vm525_vm14 = vcmp.eq.s32.totalorder %v480_v8, %v1615_v34  ;;  %vm524_vm15 = vcmp.eq.s32.totalorder %v480_v8, %v1619_v25 }
 0x243   : > { %v376_v54 = vrot.slane %v369_v27, %v368_v51  ;;  %v384_v56 = vcombine.high %v369_v27, %v369_v27  ;;  %v412_v57 = vrot.slane %v405_v28, %v368_v51  ;;  %v417_v48 = vcombine.high %v405_v28, %v405_v28 }
 0x244   : > { %v445_v49 = vrot.slane %v438_v55, %v368_v51  ;;  %v466_v50 = vrot.slane %v459_v53, %v368_v51 }
 0x245   : > { %972 = vmatpush1.xpose.msk.msra.mxu0 %vm538_vm0, %v1282_v37  ;;  %382 = vst.msk [vmem:[#allocation2] ss:$8 sm:$0x3] %vm1655_vm5, %v376_v54  ;;  %v391_v63 = vrot.slane %v384_v56, %v368_v51  ;;  %415 = vst.msk [vmem:[#allocation2 + $0x2] ss:$8 sm:$0x3] %vm1655_vm5, %v412_v57  ;;  %v424_v7 = vrot.slane %v417_v48, %v368_v51  ;;  %vm523_vm0 = vcmp.eq.s32.totalorder %v479_v43, %v1615_v34 }
 0x246   : > { %973 = vmatprep.subr.msk.mxu0 %vm537_vm1, %v1282_v37  ;;  %448 = vst.msk [vmem:[#allocation2 + $0x4] ss:$8 sm:$0x3] %vm1655_vm5, %v445_v49  ;;  %469 = vst.msk [vmem:[#allocation2 + $0x5] ss:$8 sm:$0x3] %vm1655_vm5, %v466_v50  ;;  %vm522_vm1 = vcmp.eq.s32.totalorder %v479_v43, %v1619_v25 }
 0x247   : > { %394 = vst.msk [vmem:[#allocation2 + $0x1] ss:$8 sm:$0x3] %vm1655_vm5, %v391_v63  ;;  %427 = vst.msk [vmem:[#allocation2 + $0x3] ss:$8 sm:$0x3] %vm1655_vm5, %v424_v7  ;;  %vm518_vm5 = vcmp.eq.s32.totalorder %v477_v15, %v1619_v25 }
 0x249   : > { %974 = vmatpush1.xpose.msk.msra.mxu0 %vm536_vm2, %v1282_v37  ;;  %vm521_vm2 = vcmp.eq.s32.totalorder %v478_v9, %v1615_v34 }
 0x24a   : > { %975 = vmatprep.subr.msk.mxu0 %vm535_vm3, %v1282_v37  ;;  %vm520_vm3 = vcmp.eq.s32.totalorder %v478_v9, %v1619_v25 }
 0x24d   : > { %976 = vmatpush1.xpose.msk.msra.mxu0 %vm534_vm4, %v1282_v37  ;;  %vm519_vm4 = vcmp.eq.s32.totalorder %v477_v15, %v1615_v34 }
 0x24e   : > { %977 = vmatprep.subr.msk.mxu0 %vm533_vm6, %v1282_v37  ;;  %v709_v44 = vld [vmem:[#allocation2 + $0x8] sm:$0xff]  ;;  %vm517_vm6 = vcmp.eq.s32.totalorder %v1405_v1, %v1615_v34 }
 0x24f   : > { %774 = vmatprep.mubr.f32.mxu0 %v709_v44 }
 0x251   : > { %978 = vmatpush1.xpose.msk.msra.mxu0 %vm532_vm7, %v1282_v37  ;;  %vm516_vm7 = vcmp.eq.s32.totalorder %v1405_v1, %v1619_v25  ;;  %v708_v1 = vld [vmem:[#allocation2] sm:$0xff] }
 0x252   : > { %979 = vmatprep.subr.msk.mxu0 %vm531_vm8, %v1282_v37  ;;  %vm579_vm8 = vcmp.eq.s32.totalorder %v507_v16, %v1615_v34 }
 0x255   : > { %980 = vmatpush1.xpose.msk.msra.mxu0 %vm530_vm9, %v1282_v37  ;;  %vm578_vm9 = vcmp.eq.s32.totalorder %v507_v16, %v1619_v25 }
 0x256   : > { %981 = vmatprep.subr.msk.mxu0 %vm529_vm10, %v1282_v37  ;;  %vm577_vm10 = vcmp.eq.s32.totalorder %v506_v14, %v1615_v34 }
 0x259   : > { %982 = vmatpush1.xpose.msk.msra.mxu0 %vm528_vm11, %v1282_v37  ;;  %vm576_vm11 = vcmp.eq.s32.totalorder %v506_v14, %v1619_v25 }
 0x25a   : > { %983 = vmatprep.subr.msk.mxu0 %vm527_vm12, %v1282_v37  ;;  %vm575_vm12 = vcmp.eq.s32.totalorder %v505_v17, %v1615_v34 }
 0x25d   : > { %984 = vmatpush1.xpose.msk.msra.mxu0 %vm526_vm13, %v1282_v37  ;;  %vm574_vm13 = vcmp.eq.s32.totalorder %v505_v17, %v1619_v25 }
 0x25e   : > { %985 = vmatprep.subr.msk.mxu0 %vm525_vm14, %v1282_v37  ;;  %vm573_vm14 = vcmp.eq.s32.totalorder %v504_v19, %v1615_v34 }
 0x261   : > { %986 = vmatpush1.xpose.msk.msra.mxu0 %vm524_vm15, %v1282_v37  ;;  %vm572_vm15 = vcmp.eq.s32.totalorder %v504_v19, %v1619_v25 }
 0x262   : > { %987 = vmatprep.subr.msk.mxu0 %vm523_vm0, %v1282_v37  ;;  %vm571_vm0 = vcmp.eq.s32.totalorder %v503_v12, %v1615_v34 }
 0x265   : > { %988 = vmatpush1.xpose.msk.msra.mxu0 %vm522_vm1, %v1282_v37  ;;  %vm570_vm1 = vcmp.eq.s32.totalorder %v503_v12, %v1619_v25 }
 0x266   : > { %989 = vmatprep.subr.msk.mxu0 %vm521_vm2, %v1282_v37  ;;  %vm569_vm2 = vcmp.eq.s32.totalorder %v502_v13, %v1615_v34 }
 0x269   : > { %990 = vmatpush1.xpose.msk.msra.mxu0 %vm520_vm3, %v1282_v37  ;;  %vm568_vm3 = vcmp.eq.s32.totalorder %v502_v13, %v1619_v25 }
 0x26a   : > { %991 = vmatprep.subr.msk.mxu0 %vm519_vm4, %v1282_v37  ;;  %vm567_vm4 = vcmp.eq.s32.totalorder %v501_v20, %v1615_v34 }
 0x26d   : > { %992 = vmatpush1.xpose.msk.msra.mxu0 %vm518_vm5, %v1282_v37  ;;  %vm566_vm5 = vcmp.eq.s32.totalorder %v501_v20, %v1619_v25 }
 0x26e   : > { %993 = vmatprep.subr.msk.mxu0 %vm517_vm6, %v1282_v37  ;;  %vm565_vm6 = vcmp.eq.s32.totalorder %v500_v21, %v1615_v34 }
 0x271   : > { %994 = vmatpush1.xpose.msk.msra.mxu0 %vm516_vm7, %v1282_v37  ;;  %vm564_vm7 = vcmp.eq.s32.totalorder %v500_v21, %v1619_v25 }
 0x272   : > { %995 = vmatprep.subr.msk.mxu0 %vm579_vm8, %v1282_v37  ;;  %vm563_vm8 = vcmp.eq.s32.totalorder %v499_v22, %v1615_v34 }
 0x275   : > { %996 = vmatpush2.xpose.msk.msra.mxu0 %vm578_vm9, %v1282_v37  ;;  %vm562_vm9 = vcmp.eq.s32.totalorder %v499_v22, %v1619_v25 }
 0x276   : > { %997 = vmatprep.subr.msk.mxu0 %vm577_vm10, %v1282_v37  ;;  %vm561_vm10 = vcmp.eq.s32.totalorder %v498_v23, %v1615_v34 }
 0x279   : > { %998 = vmatpush2.xpose.msk.msra.mxu0 %vm576_vm11, %v1282_v37  ;;  %vm560_vm11 = vcmp.eq.s32.totalorder %v498_v23, %v1619_v25 }
 0x27a   : > { %999 = vmatprep.subr.msk.mxu0 %vm575_vm12, %v1282_v37  ;;  %vm559_vm12 = vcmp.eq.s32.totalorder %v497_v24, %v1615_v34 }
 0x27d   : > { %1000 = vmatpush2.xpose.msk.msra.mxu0 %vm574_vm13, %v1282_v37  ;;  %vm558_vm13 = vcmp.eq.s32.totalorder %v497_v24, %v1619_v25 }
 0x27e   : > { %1001 = vmatprep.subr.msk.mxu0 %vm573_vm14, %v1282_v37  ;;  %vm557_vm14 = vcmp.eq.s32.totalorder %v496_v26, %v1615_v34 }
 0x281   : > { %1002 = vmatpush2.xpose.msk.msra.mxu0 %vm572_vm15, %v1282_v37  ;;  %vm556_vm15 = vcmp.eq.s32.totalorder %v496_v26, %v1619_v25 }
 0x282   : > { %1003 = vmatprep.subr.msk.mxu0 %vm571_vm0, %v1282_v37  ;;  %vm555_vm0 = vcmp.eq.s32.totalorder %v495_v29, %v1615_v34 }
 0x285   : > { %1004 = vmatpush2.xpose.msk.msra.mxu0 %vm570_vm1, %v1282_v37  ;;  %vm554_vm1 = vcmp.eq.s32.totalorder %v495_v29, %v1619_v25 }
 0x286   : > { %1005 = vmatprep.subr.msk.mxu0 %vm569_vm2, %v1282_v37  ;;  %vm553_vm2 = vcmp.eq.s32.totalorder %v494_v30, %v1615_v34 }
 0x289   : > { %1006 = vmatpush2.xpose.msk.msra.mxu0 %vm568_vm3, %v1282_v37  ;;  %vm552_vm3 = vcmp.eq.s32.totalorder %v494_v30, %v1619_v25 }
 0x28a   : > { %1007 = vmatprep.subr.msk.mxu0 %vm567_vm4, %v1282_v37  ;;  %vm551_vm4 = vcmp.eq.s32.totalorder %v493_v31, %v1615_v34 }
 0x28d   : > { %1008 = vmatpush2.xpose.msk.msra.mxu0 %vm566_vm5, %v1282_v37  ;;  %vm550_vm5 = vcmp.eq.s32.totalorder %v493_v31, %v1619_v25 }
 0x28e   : > { %1009 = vmatprep.subr.msk.mxu0 %vm565_vm6, %v1282_v37  ;;  %vm549_vm6 = vcmp.eq.s32.totalorder %v492_v33, %v1615_v34 }
 0x291   : > { %1010 = vmatpush2.xpose.msk.msra.mxu0 %vm564_vm7, %v1282_v37  ;;  %vm548_vm7 = vcmp.eq.s32.totalorder %v492_v33, %v1619_v25 }
 0x292   : > { %1011 = vmatprep.subr.msk.mxu0 %vm563_vm8, %v1282_v37 }
 0x295   : > { %1012 = vmatpush2.xpose.msk.msra.mxu0 %vm562_vm9, %v1282_v37 }
 0x296   : > { %1013 = vmatprep.subr.msk.mxu0 %vm561_vm10, %v1282_v37 }
 0x299   : > { %1014 = vmatpush2.xpose.msk.msra.mxu0 %vm560_vm11, %v1282_v37 }
 0x29a   : > { %1015 = vmatprep.subr.msk.mxu0 %vm559_vm12, %v1282_v37 }
 0x29d   : > { %1016 = vmatpush2.xpose.msk.msra.mxu0 %vm558_vm13, %v1282_v37 }
 0x29e   : > { %1017 = vmatprep.subr.msk.mxu0 %vm557_vm14, %v1282_v37 }
 0x2a1   : > { %1018 = vmatpush2.xpose.msk.msra.mxu0 %vm556_vm15, %v1282_v37 }
 0x2a2   : > { %1019 = vmatprep.subr.msk.mxu0 %vm555_vm0, %v1282_v37 }
 0x2a5   : > { %1020 = vmatpush2.xpose.msk.msra.mxu0 %vm554_vm1, %v1282_v37 }
 0x2a6   : > { %1021 = vmatprep.subr.msk.mxu0 %vm553_vm2, %v1282_v37 }
 0x2a9   : > { %1022 = vmatpush2.xpose.msk.msra.mxu0 %vm552_vm3, %v1282_v37 }
 0x2aa   : > { %1023 = vmatprep.subr.msk.mxu0 %vm551_vm4, %v1282_v37 }
 0x2ad   : > { %1024 = vmatpush2.xpose.msk.msra.mxu0 %vm550_vm5, %v1282_v37 }
 0x2ae   : > { %1025 = vmatprep.subr.msk.mxu0 %vm549_vm6, %v1282_v37 }
 0x2b1   : > { %1026 = vmatpush2.xpose.msk.msra.mxu0 %vm548_vm7, %v1282_v37 }
 0x2b4   : > { %775 = vmatmul.mubr.f32.vlgmr.msra.gmra.mxu0 %v708_v1 }
 0x374   : > { %v776_v32 = vpop.f32.mrf.mxu0 }
 0x375   : > { %781 = vst [vmem:[%s1483_s17] sm:$0xff] %v776_v32 }
 0x376   : > { %v778_v40 = vpop.f32.mrf.mxu0 }
 0x377   : > { %782 = vst [vmem:[%s1483_s17 + $0x8] sm:$0xff] %v778_v40 }
 0x378   : > { %1178 = shalt.err (!%p1175_p2)
}
 0x379   : > { %s1179_s11 = scalar_lea.hbm %s1818_s30, 256  ;;  %s1183_s16 = scalar_lea.hbm %s1857_s1, 512 }
 0x37a   : > { %p1180_p4 = scmp.ne.s32.totalorder %s1818_s30, %s1179_s11  ;;  %p1184_p0 = scmp.lt.s32.totalorder %s1818_s30, %s1857_s1 }
 0x37b   : > { %p1185_p6 = scmp.lt.s32.totalorder %s1183_s16, %s1179_s11 }
 0x37c   : > { %p1181_p9 = pnand %p1180_p4, %p1883_p13 }
 0x37d   : > { %p1186_p11 = por %p1185_p6, %p1184_p0 }
 0x37e   : > { %p1182_p7 = pneg %p1181_p9 }
 0x380   : > { %p1187_p12 = pnand %p1186_p11, %p1182_p7 }
 0x382   : > { %1190 = shalt.err (!%p1187_p12)
}
 0x383   : > { %1036 = dma.vmem_to_hbm [thread:$0]  (%p1883_p13), %s799_s27, 256, %s1818_s30, %s784_s2  }
 0x384 PF: > { %s810_s22 = sand.u32 1, %s1241_s6   ;;  %p1884_p1 = scmp.ne.s32.totalorder %s1863_s19, 0 }
 0x385   : > { %p1885_p3 = scmp.ge.s32.totalorder %s1253_s9, 2  ;;  %s811_s23 = scalar_lea.sflag [#allocation5], %s810_s22 }
 0x387   : > { %p1043_p5 = pnand %p1885_p3, %p1884_p1 }
 0x389   : > { %p1044_p8 = pneg %p1043_p5 }
 0x38b   : > { %1236 = dma.done.wait (%p1044_p8), %s811_s23, 256  }
 0x38c   : > { %1238 = vsyncadd (%p1044_p8), %s811_s23, 4294967040  ;;  %p14_p10 = scmp.ge.s32.totalorder %s1321_s12, 4   ;;  %s1886_s6 = smov %s1245_s7 }
 0x38d   : > { %s1887_s7 = smov %s1249_s8  ;;  %s1888_s8 = smov %s1333_s15 }
 0x38e   : > { %s1889_s9 = smov %s1321_s12  ;;  %16 = sbr.rel (!%p14_p10) target bundleno = 5 (0x5), region = 94 }
 0x393   :  { %816 = vsyncpa [#allocation4], 1 }
 0x394   :  { %818 = vsyncpa [#allocation4 + $0x1], 1 }
 0x395   :  { %819 = vsyncpa [#allocation5], 1 }
 0x396   :  { %821 = vsyncpa [#allocation5 + $0x1], 1 }

</bundles_post_ra>
